<compile_context>
chip_gen: v7x
topology: tpu7x:2x2x1
jax: 0.10.0
libtpu: 0.0.40
codegen_flags: <defaults>
</compile_context>

<pallas_src>
import jax
import jax.numpy as jnp
from jax.experimental import pallas as pl
from jax.experimental.pallas import tpu as pltpu


# ----------------------------------------------------------------------------
# Fused forward Pallas kernel
# ----------------------------------------------------------------------------
_VMEM = pl.BlockSpec(memory_space=pltpu.MemorySpace.VMEM)


def _make_fused_forward_kernel(num_node, num_dec_layers):
    """Builds the fused kernel for a static node count / decoder depth."""
    two_n = 2 * num_node

    def kernel(*refs):
        # refs: A, transA, T, transT, lhs_a, lhs_t, drop_mask,
        #       (w, b) * num_dec_layers,   then outputs z, z1, z2
        a_ref, ta_ref, t_ref, tt_ref, lhs_a_ref, lhs_t_ref, mask_ref = refs[:7]
        wb_refs = refs[7:7 + 2 * num_dec_layers]
        z_ref, z1_ref, z2_ref = refs[7 + 2 * num_dec_layers:]

        # recon_feature: xa = A @ transA, xt = T @ transT
        # (x = concat([xa, xt], axis=0) is kept implicit: the stacked LHS is
        #  pre-split column-wise so no in-kernel concatenate is required.)
        xa = jnp.dot(a_ref[...], ta_ref[...], preferred_element_type=jnp.float32)
        xt = jnp.dot(t_ref[...], tt_ref[...], preferred_element_type=jnp.float32)

        # [z; z1; z2] = [adj; masked; neg] @ x  -- one MXU pass with M = 6N
        zz = (jnp.dot(lhs_a_ref[...], xa, preferred_element_type=jnp.float32)
              + jnp.dot(lhs_t_ref[...], xt, preferred_element_type=jnp.float32))

        z_ref[...] = zz[:two_n]

        # fused inverted dropout on the stacked [z1; z2]
        # (mask is precomputed in XLA and already scaled by 1/(1-p))
        h = zz[two_n:] * mask_ref[...]

        # decoder MLP: ReLU on all layers but the last, weights VMEM-resident,
        # run ONCE on the [4N, .] stack instead of twice on [2N, .].
        for li in range(num_dec_layers):
            w_ref = wb_refs[2 * li]
            b_ref = wb_refs[2 * li + 1]
            h = jnp.dot(h, w_ref[...], preferred_element_type=jnp.float32) + b_ref[...]
            if li < num_dec_layers - 1:          # static Python flag -> fused act
                h = jnp.maximum(h, 0.0)

        z1_ref[...] = h[:two_n]
        z2_ref[...] = h[two_n:]

    return kernel


def fused_forward(A, T, transA, transT, lhs_stacked, drop_mask, decoder_params):
    """One pallas_call computing z, z1, z2 with everything resident in VMEM."""
    num_node = A.shape[0]
    two_n = 2 * num_node
    recon_dim = transA.shape[1]
    hidden_dim = decoder_params[-1][0].shape[1]
    num_dec_layers = len(decoder_params)

    # Split the stacked LHS column-wise: columns [:N] hit xa rows, [N:] hit xt.
    lhs_a = lhs_stacked[:, :num_node]
    lhs_t = lhs_stacked[:, num_node:]

    flat_wb = []
    for (w, b) in decoder_params:
        flat_wb += [w, b]

    inputs = [A, transA, T, transT, lhs_a, lhs_t, drop_mask] + flat_wb

    # Advisory cost estimate so XLA can schedule surrounding ops around the call.
    flops = 2.0 * (A.shape[0] * A.shape[1] * recon_dim
                   + T.shape[0] * T.shape[1] * recon_dim
                   + lhs_stacked.shape[0] * lhs_stacked.shape[1] * recon_dim)
    m_dec = 2 * two_n
    for (w, _b) in decoder_params:
        flops += 2.0 * m_dec * w.shape[0] * w.shape[1]
    out_elems = two_n * recon_dim + 2 * two_n * hidden_dim
    bytes_accessed = 4 * (sum(int(a.size) for a in inputs) + out_elems)

    kernel = _make_fused_forward_kernel(num_node, num_dec_layers)

    z, z1, z2 = pl.pallas_call(
        kernel,
        out_shape=(
            jax.ShapeDtypeStruct((two_n, recon_dim), jnp.float32),
            jax.ShapeDtypeStruct((two_n, hidden_dim), jnp.float32),
            jax.ShapeDtypeStruct((two_n, hidden_dim), jnp.float32),
        ),
        in_specs=[_VMEM] * len(inputs),
        out_specs=(_VMEM, _VMEM, _VMEM),
        cost_estimate=pl.CostEstimate(flops=int(flops), transcendentals=0,
                                      bytes_accessed=int(bytes_accessed)),
    )(*inputs)
    return z, z1, z2


# ----------------------------------------------------------------------------
# Model glue (parameter init, edge utilities, forward)
# ----------------------------------------------------------------------------
def xavier_uniform(key, shape, gain):
    fan_in, fan_out = shape
    bound = gain * jnp.sqrt(6.0 / (fan_in + fan_out))
    return jax.random.uniform(key, shape, jnp.float32, -bound, bound)


def linear_init(key, in_dim, out_dim):
    kw, kb = jax.random.split(key)
    bound = 1.0 / jnp.sqrt(in_dim)
    w = jax.random.uniform(kw, (in_dim, out_dim), jnp.float32, -bound, bound)
    b = jax.random.uniform(kb, (1, out_dim), jnp.float32, -bound, bound)
    return w, b


def init_model_params(key, num_node, feat_dim, recon_dim, hidden_dim, decoder_layers):
    keys = jax.random.split(key, 3 + decoder_layers)
    params = {
        "transA": xavier_uniform(keys[0], (num_node, recon_dim), 1.414),
        "transT": xavier_uniform(keys[1], (feat_dim, recon_dim), 1.414),
        "decoder": [],
    }
    params["decoder"].append(linear_init(keys[2], recon_dim, hidden_dim))
    for i in range(decoder_layers):
        params["decoder"].append(linear_init(keys[3 + i], hidden_dim, hidden_dim))
    return params


def edge_index_to_matrix(edge_index, n):
    """Dense [n, n] f32 matrix from a [2, E] edge index (duplicates accumulate)."""
    src, dst = edge_index[0], edge_index[1]
    return jnp.zeros((n, n), jnp.float32).at[src, dst].add(1.0)


def model_forward(params, data_matrix, data_T, adj_dense, edge_index,
                  num_nodes, dropout_rate, key):
    num_edges = edge_index.shape[1]
    # mask: split edges into (remaining, masked) halves (simple deterministic
    # mask, the reference's self.mask callable is not provided)
    masked_edges = edge_index[:, num_edges // 2:]

    # random negative sampler (torch.randint equivalent)
    key, k_neg, k_drop = jax.random.split(key, 3)
    neg_edges = jax.random.randint(k_neg, masked_edges.shape, 0, num_nodes,
                                   dtype=jnp.int32)

    total_rows = 2 * num_nodes            # rows of x = concat([A-emb, T-emb], 0)
    masked_mat = edge_index_to_matrix(masked_edges, total_rows)
    neg_mat = edge_index_to_matrix(neg_edges, total_rows)
    # TODO(synk): at realistic graph sizes replace these dense [2N,2N] matrices
    # + matmul with a gather/segment-sum over edge_index (O(E*D), not O(N^2*D)),
    # and tile the kernel with a grid (v7x 64 MiB VMEM is the binding limit).
    lhs_stacked = jnp.concatenate([adj_dense, masked_mat, neg_mat], axis=0)

    recon_dim = params["transA"].shape[1]
    if dropout_rate > 0.0:
        keep = jax.random.bernoulli(k_drop, 1.0 - dropout_rate,
                                    (2 * total_rows, recon_dim))
        drop_mask = keep.astype(jnp.float32) / (1.0 - dropout_rate)
    else:
        drop_mask = jnp.ones((2 * total_rows, recon_dim), jnp.float32)

    z, z1, z2 = fused_forward(data_matrix, data_T,
                              params["transA"], params["transT"],
                              lhs_stacked, drop_mask, params["decoder"])

    # TODO(synk): loss = ce_loss(z, z1) + ce_loss(z, z2); loss.backward();
    #             clip_grad_norm_ -- not reproducible (loss fns undefined, autograd).
    return z, z1, z2


# ----------------------------------------------------------------------------
# Demo
# ----------------------------------------------------------------------------
if __name__ == "__main__":
    num_node, feat_dim, recon_dim, hidden_dim = 16, 32, 128, 128
    decoder_layers = 2
    dropout_rate = 0.1

    root = jax.random.PRNGKey(0)
    k_params, k_mat, k_T, k_adj, k_edges, k_fwd = jax.random.split(root, 6)

    params = init_model_params(k_params, num_node, feat_dim, recon_dim,
                               hidden_dim, decoder_layers)

    # data.matrix : [num_node, num_node] (node-node matrix, e.g. adjacency)
    data_matrix = (jax.random.uniform(k_mat, (num_node, num_node)) > 0.7
                   ).astype(jnp.float32)
    # data.T : [num_node, feat_dim] node features
    data_T = jax.random.normal(k_T, (num_node, feat_dim), jnp.float32)
    # adj_dense_matrix multiplies x (= concat of A- and T-embeddings, 2*num_node rows)
    adj_dense = (jax.random.uniform(k_adj, (2 * num_node, 2 * num_node)) > 0.8
                 ).astype(jnp.float32)
    # edge_index : [2, E]
    num_edges = 24
    edge_index = jax.random.randint(k_edges, (2, num_edges), 0, num_node,
                                    dtype=jnp.int32)

    z, z1, z2 = model_forward(params, data_matrix, data_T, adj_dense,
                              edge_index, num_node, dropout_rate, k_fwd)
    jax.block_until_ready((z, z1, z2))

    assert z.shape == (2 * num_node, recon_dim)
    assert z1.shape == (2 * num_node, hidden_dim)
    assert z2.shape == (2 * num_node, hidden_dim)
    assert bool(jnp.all(jnp.isfinite(z))) and bool(jnp.all(jnp.isfinite(z1)))
    print("KERNEL_OK")
</pallas_src>

<mosaic_0001>
module attributes {stable_mosaic.version = 11 : i64} {
  func.func @kernel(%arg0: memref<16x16xf32, #tpu.memory_space<vmem>>, %arg1: memref<16x128xf32, #tpu.memory_space<vmem>>, %arg2: memref<16x32xf32, #tpu.memory_space<vmem>>, %arg3: memref<32x128xf32, #tpu.memory_space<vmem>>, %arg4: memref<96x16xf32, #tpu.memory_space<vmem>>, %arg5: memref<96x16xf32, #tpu.memory_space<vmem>>, %arg6: memref<64x128xf32, #tpu.memory_space<vmem>>, %arg7: memref<128x128xf32, #tpu.memory_space<vmem>>, %arg8: memref<1x128xf32, #tpu.memory_space<vmem>>, %arg9: memref<128x128xf32, #tpu.memory_space<vmem>>, %arg10: memref<1x128xf32, #tpu.memory_space<vmem>>, %arg11: memref<128x128xf32, #tpu.memory_space<vmem>>, %arg12: memref<1x128xf32, #tpu.memory_space<vmem>>, %arg13: memref<32x128xf32, #tpu.memory_space<vmem>>, %arg14: memref<32x128xf32, #tpu.memory_space<vmem>>, %arg15: memref<32x128xf32, #tpu.memory_space<vmem>>) attributes {dimension_semantics = [], scalar_prefetch = 0 : i64, scratch_operands = 0 : i64, tpu.core_type = #tpu.core_type<tc>} {
    %c0 = arith.constant 0 : index
    %c0_0 = arith.constant 0 : index
    %0 = vector.load %arg0[%c0, %c0_0] : memref<16x16xf32, #tpu.memory_space<vmem>>, vector<16x16xf32>
    %c0_1 = arith.constant 0 : index
    %c0_2 = arith.constant 0 : index
    %1 = vector.load %arg1[%c0_1, %c0_2] : memref<16x128xf32, #tpu.memory_space<vmem>>, vector<16x128xf32>
    %cst = arith.constant dense<0.000000e+00> : vector<16x128xf32>
    %2 = tpu.matmul %0, %1, %cst {dimension_numbers = #tpu.dot_dimension_numbers<[1], [0], [0], [1], [0, 0, 1, 1], [], []>} : vector<16x16xf32>, vector<16x128xf32>, vector<16x128xf32> -> vector<16x128xf32>
    %c0_3 = arith.constant 0 : index
    %c0_4 = arith.constant 0 : index
    %3 = vector.load %arg2[%c0_3, %c0_4] : memref<16x32xf32, #tpu.memory_space<vmem>>, vector<16x32xf32>
    %c0_5 = arith.constant 0 : index
    %c0_6 = arith.constant 0 : index
    %4 = vector.load %arg3[%c0_5, %c0_6] : memref<32x128xf32, #tpu.memory_space<vmem>>, vector<32x128xf32>
    %cst_7 = arith.constant dense<0.000000e+00> : vector<16x128xf32>
    %5 = tpu.matmul %3, %4, %cst_7 {dimension_numbers = #tpu.dot_dimension_numbers<[1], [0], [0], [1], [0, 0, 1, 1], [], []>} : vector<16x32xf32>, vector<32x128xf32>, vector<16x128xf32> -> vector<16x128xf32>
    %c0_8 = arith.constant 0 : index
    %c0_9 = arith.constant 0 : index
    %6 = vector.load %arg4[%c0_8, %c0_9] : memref<96x16xf32, #tpu.memory_space<vmem>>, vector<96x16xf32>
    %cst_10 = arith.constant dense<0.000000e+00> : vector<96x128xf32>
    %7 = tpu.matmul %6, %2, %cst_10 {dimension_numbers = #tpu.dot_dimension_numbers<[1], [0], [0], [1], [0, 0, 1, 1], [], []>} : vector<96x16xf32>, vector<16x128xf32>, vector<96x128xf32> -> vector<96x128xf32>
    %c0_11 = arith.constant 0 : index
    %c0_12 = arith.constant 0 : index
    %8 = vector.load %arg5[%c0_11, %c0_12] : memref<96x16xf32, #tpu.memory_space<vmem>>, vector<96x16xf32>
    %cst_13 = arith.constant dense<0.000000e+00> : vector<96x128xf32>
    %9 = tpu.matmul %8, %5, %cst_13 {dimension_numbers = #tpu.dot_dimension_numbers<[1], [0], [0], [1], [0, 0, 1, 1], [], []>} : vector<96x16xf32>, vector<16x128xf32>, vector<96x128xf32> -> vector<96x128xf32>
    %10 = arith.addf %7, %9 : vector<96x128xf32>
    %11 = vector.extract_strided_slice %10 {offsets = [0, 0], sizes = [32, 128], strides = [1, 1]} : vector<96x128xf32> to vector<32x128xf32>
    %c0_14 = arith.constant 0 : index
    %c0_15 = arith.constant 0 : index
    %12 = vector.load %arg13[%c0_14, %c0_15] : memref<32x128xf32, #tpu.memory_space<vmem>>, vector<32x128xf32>
    tpu.vector_store %arg13[%c0_14, %c0_15], %11 {strides = array<i32>} : memref<32x128xf32, #tpu.memory_space<vmem>>, vector<32x128xf32>,
    %13 = vector.extract_strided_slice %10 {offsets = [32, 0], sizes = [64, 128], strides = [1, 1]} : vector<96x128xf32> to vector<64x128xf32>
    %c0_16 = arith.constant 0 : index
    %c0_17 = arith.constant 0 : index
    %14 = vector.load %arg6[%c0_16, %c0_17] : memref<64x128xf32, #tpu.memory_space<vmem>>, vector<64x128xf32>
    %15 = arith.mulf %13, %14 : vector<64x128xf32>
    %c0_18 = arith.constant 0 : index
    %c0_19 = arith.constant 0 : index
    %16 = vector.load %arg7[%c0_18, %c0_19] : memref<128x128xf32, #tpu.memory_space<vmem>>, vector<128x128xf32>
    %cst_20 = arith.constant dense<0.000000e+00> : vector<64x128xf32>
    %17 = tpu.matmul %15, %16, %cst_20 {dimension_numbers = #tpu.dot_dimension_numbers<[1], [0], [0], [1], [0, 0, 1, 1], [], []>} : vector<64x128xf32>, vector<128x128xf32>, vector<64x128xf32> -> vector<64x128xf32>
    %c0_21 = arith.constant 0 : index
    %c0_22 = arith.constant 0 : index
    %18 = vector.load %arg8[%c0_21, %c0_22] : memref<1x128xf32, #tpu.memory_space<vmem>>, vector<1x128xf32>
    %19 = vector.broadcast %18 : vector<1x128xf32> to vector<64x128xf32>
    %20 = arith.addf %17, %19 : vector<64x128xf32>
    %cst_23 = arith.constant 0.000000e+00 : f32
    %21 = vector.broadcast %cst_23 : f32 to vector<64x128xf32>
    %22 = arith.maximumf %20, %21 : vector<64x128xf32>
    %c0_24 = arith.constant 0 : index
    %c0_25 = arith.constant 0 : index
    %23 = vector.load %arg9[%c0_24, %c0_25] : memref<128x128xf32, #tpu.memory_space<vmem>>, vector<128x128xf32>
    %cst_26 = arith.constant dense<0.000000e+00> : vector<64x128xf32>
    %24 = tpu.matmul %22, %23, %cst_26 {dimension_numbers = #tpu.dot_dimension_numbers<[1], [0], [0], [1], [0, 0, 1, 1], [], []>} : vector<64x128xf32>, vector<128x128xf32>, vector<64x128xf32> -> vector<64x128xf32>
    %c0_27 = arith.constant 0 : index
    %c0_28 = arith.constant 0 : index
    %25 = vector.load %arg10[%c0_27, %c0_28] : memref<1x128xf32, #tpu.memory_space<vmem>>, vector<1x128xf32>
    %26 = vector.broadcast %25 : vector<1x128xf32> to vector<64x128xf32>
    %27 = arith.addf %24, %26 : vector<64x128xf32>
    %cst_29 = arith.constant 0.000000e+00 : f32
    %28 = vector.broadcast %cst_29 : f32 to vector<64x128xf32>
    %29 = arith.maximumf %27, %28 : vector<64x128xf32>
    %c0_30 = arith.constant 0 : index
    %c0_31 = arith.constant 0 : index
    %30 = vector.load %arg11[%c0_30, %c0_31] : memref<128x128xf32, #tpu.memory_space<vmem>>, vector<128x128xf32>
    %cst_32 = arith.constant dense<0.000000e+00> : vector<64x128xf32>
    %31 = tpu.matmul %29, %30, %cst_32 {dimension_numbers = #tpu.dot_dimension_numbers<[1], [0], [0], [1], [0, 0, 1, 1], [], []>} : vector<64x128xf32>, vector<128x128xf32>, vector<64x128xf32> -> vector<64x128xf32>
    %c0_33 = arith.constant 0 : index
    %c0_34 = arith.constant 0 : index
    %32 = vector.load %arg12[%c0_33, %c0_34] : memref<1x128xf32, #tpu.memory_space<vmem>>, vector<1x128xf32>
    %33 = vector.broadcast %32 : vector<1x128xf32> to vector<64x128xf32>
    %34 = arith.addf %31, %33 : vector<64x128xf32>
    %35 = vector.extract_strided_slice %34 {offsets = [0, 0], sizes = [32, 128], strides = [1, 1]} : vector<64x128xf32> to vector<32x128xf32>
    %c0_35 = arith.constant 0 : index
    %c0_36 = arith.constant 0 : index
    %36 = vector.load %arg14[%c0_35, %c0_36] : memref<32x128xf32, #tpu.memory_space<vmem>>, vector<32x128xf32>
    tpu.vector_store %arg14[%c0_35, %c0_36], %35 {strides = array<i32>} : memref<32x128xf32, #tpu.memory_space<vmem>>, vector<32x128xf32>,
    %37 = vector.extract_strided_slice %34 {offsets = [32, 0], sizes = [32, 128], strides = [1, 1]} : vector<64x128xf32> to vector<32x128xf32>
    %c0_37 = arith.constant 0 : index
    %c0_38 = arith.constant 0 : index
    %38 = vector.load %arg15[%c0_37, %c0_38] : memref<32x128xf32, #tpu.memory_space<vmem>>, vector<32x128xf32>
    tpu.vector_store %arg15[%c0_37, %c0_38], %37 {strides = array<i32>} : memref<32x128xf32, #tpu.memory_space<vmem>>, vector<32x128xf32>,
    return
  }
}

</mosaic_0001>

<bundles_post_ra>
// kernel: tpu_custom_call.1
= control target key start
LH: loop header
LB: loop body
LE: loop exit
PB: predicated region body
PF: predicated region fallthrough
CT: control target
= control target key end

     0   :  { %21 = vsyncpa [#allocation3], 0  ;;  %s2266_s0 = inlined_call_operand.hbm [shape: f32[16,16], index: 0, kind: input, shape index: {}]   ;;  %s2267_s1 = inlined_call_operand.hbm [shape: f32[16,128], index: 1, kind: input, shape index: {}]   ;;  %s2268_s2 = inlined_call_operand.hbm [shape: f32[16,32], index: 2, kind: input, shape index: {}]   ;;  %s2269_s3 = inlined_call_operand.hbm [shape: f32[32,128], index: 3, kind: input, shape index: {}]   ;;  %s2270_s4 = inlined_call_operand.vmem [shape: f32[96,16], index: 4, kind: input, shape index: {}]   ;;  %s2271_s5 = inlined_call_operand.vmem [shape: f32[96,16], index: 5, kind: input, shape index: {}]   ;;  %s2272_s6 = inlined_call_operand.hbm [shape: f32[64,128], index: 6, kind: input, shape index: {}]   ;;  %s2273_s7 = inlined_call_operand.vmem [shape: f32[128,128], index: 7, kind: input, shape index: {}]   ;;  %s2274_s8 = inlined_call_operand.vmem [shape: f32[1,128], index: 8, kind: input, shape index: {}]   ;;  %s2275_s9 = inlined_call_operand.vmem [shape: f32[128,128], index: 9, kind: input, shape index: {}]   ;;  %s2276_s10 = inlined_call_operand.vmem [shape: f32[1,128], index: 10, kind: input, shape index: {}]   ;;  %s2277_s11 = inlined_call_operand.hbm [shape: f32[128,128], index: 11, kind: input, shape index: {}]   ;;  %s2278_s12 = inlined_call_operand.vmem [shape: f32[1,128], index: 12, kind: input, shape index: {}]   ;;  %s2279_s13 = inlined_call_operand.hbm [shape: f32[32,128], index: 13, kind: output, shape index: {0}]   ;;  %s2280_s14 = inlined_call_operand.hbm [shape: f32[32,128], index: 14, kind: output, shape index: {1}]   ;;  %s2281_s15 = inlined_call_operand.hbm [shape: f32[32,128], index: 15, kind: output, shape index: {2}]  }
   0x1   :  { %22 = vsyncpa [#allocation6], 0 }
   0x2   :  { %23 = vsyncpa [#allocation9], 0 }
   0x3   :  { %24 = vsyncpa [#allocation12], 0 }
   0x4   :  { %25 = vsyncpa [#allocation4], 0 }
   0x5   :  { %26 = vsyncpa [#allocation15], 0  ;;  %s1814_s18 = smov [#allocation5]   ;;  %s1815_s20 = smov [#allocation8]  }
   0x6   :  { %s44_s19 = sshll.u32 %s1814_s18, 4  ;;  %s68_s21 = sshll.u32 %s1815_s20, 4  ;;  %s45_s19 = int_to_ptr.vmem [resolvable:$true] %s44_s19  ;;  %s1905_s21 = int_to_ptr.vmem [resolvable:$true] %s68_s21 }
   0x7   :  { %s1604_s24 = scalar_lea.hbm %s2267_s1, 256 }
   0x8   :  { %p1605_p0 = scmp.ne.s32.totalorder %s2267_s1, %s1604_s24  ;;  %p1608_p1 = scmp.lt.u32.totalorder %s1604_s24, %s2267_s1 }
   0xa   :  { %p1610_p2 = pnand %p1608_p1, %p1605_p0 }
   0xc   :  { %1613 = shalt.err (!%p1610_p2)
}
   0xd   :  { %s1614_s29 = scalar_lea.vmem %s45_s19, 256  ;;  %p1619_p4 = scmp.lt.s32.totalorder %s45_s19, %s45_s19 }
   0xe   :  { %p1615_p3 = scmp.ne.s32.totalorder %s45_s19, %s1614_s29  ;;  %p1620_p5 = scmp.lt.s32.totalorder %s1614_s29, %s1614_s29 }
  0x10   :  { %p1621_p6 = por %p1620_p5, %p1619_p4 }
  0x12   :  { %p1622_p7 = pnand %p1621_p6, %p1615_p3 }
  0x14   :  { %1625 = shalt.err (!%p1622_p7)
}
  0x15   :  { %s1816_s30 = smov 128   ;;  %s1817_s16 = smov 8  }
  0x16   :  { %50 = dma.hbm_to_vmem [thread:$0]  %s2267_s1, 256, %s45_s19, [#allocation6], %s1816_s30, %s1816_s30, %s1817_s16  }
  0x17   :  { %s1626_s23 = scalar_lea.hbm %s2269_s3, 512 }
  0x18   :  { %p1627_p8 = scmp.ne.s32.totalorder %s2269_s3, %s1626_s23  ;;  %p1630_p9 = scmp.lt.u32.totalorder %s1626_s23, %s2269_s3 }
  0x1a   :  { %p1632_p10 = pnand %p1630_p9, %p1627_p8 }
  0x1c   :  { %1635 = shalt.err (!%p1632_p10)
}
  0x1d   :  { %s1636_s28 = scalar_lea.vmem %s1905_s21, 512  ;;  %p1641_p12 = scmp.lt.s32.totalorder %s1905_s21, %s1905_s21 }
  0x1e   :  { %p1637_p11 = scmp.ne.s32.totalorder %s1905_s21, %s1636_s28  ;;  %p1642_p13 = scmp.lt.s32.totalorder %s1636_s28, %s1636_s28 }
  0x20   :  { %p1643_p0 = por %p1642_p13, %p1641_p12 }
  0x22   :  { %p1644_p1 = pnand %p1643_p0, %p1637_p11 }
  0x24   :  { %1647 = shalt.err (!%p1644_p1)
}
  0x25   :  { %74 = dma.hbm_to_vmem [thread:$0]  %s2269_s3, 512, %s1905_s21, [#allocation9], %s1816_s30, %s1816_s30, %s1817_s16  }
  0x26   :  { %s1818_s29 = smov [#allocation2]   ;;  %s1819_s18 = smov [#allocation7]  }
  0x27   :  { %s32_s17 = sshll.u32 %s1818_s29, 4  ;;  %s56_s20 = sshll.u32 %s1819_s18, 4  ;;  %s33_s17 = int_to_ptr.vmem [resolvable:$true] %s32_s17  ;;  %s1942_s20 = int_to_ptr.vmem [resolvable:$true] %s56_s20 }
  0x28   :  { %s1648_s24 = scalar_lea.hbm %s2266_s0, 256 }
  0x29   :  { %p1649_p2 = scmp.ne.s32.totalorder %s2266_s0, %s1648_s24  ;;  %p1652_p3 = scmp.lt.u32.totalorder %s1648_s24, %s2266_s0 }
  0x2b   :  { %p1654_p4 = pnand %p1652_p3, %p1649_p2 }
  0x2d   :  { %1657 = shalt.err (!%p1654_p4)
}
  0x2e   :  { %s1658_s3 = scalar_lea.vmem %s33_s17, 256  ;;  %p1663_p6 = scmp.lt.s32.totalorder %s33_s17, %s33_s17 }
  0x2f   :  { %p1659_p5 = scmp.ne.s32.totalorder %s33_s17, %s1658_s3  ;;  %p1664_p7 = scmp.lt.s32.totalorder %s1658_s3, %s1658_s3 }
  0x31   :  { %p1665_p8 = por %p1664_p7, %p1663_p6 }
  0x33   :  { %p1666_p9 = pnand %p1665_p8, %p1659_p5 }
  0x35   :  { %1669 = shalt.err (!%p1666_p9)
}
  0x36   :  { %38 = dma.hbm_to_vmem [thread:$0]  %s2266_s0, 256, %s33_s17, [#allocation3], %s1816_s30, %s1816_s30, %s1817_s16  }
  0x37   :  { %s1670_s18 = scalar_lea.hbm %s2268_s2, 256 }
  0x38   :  { %p1671_p10 = scmp.ne.s32.totalorder %s2268_s2, %s1670_s18  ;;  %p1674_p11 = scmp.lt.u32.totalorder %s1670_s18, %s2268_s2 }
  0x3a   :  { %p1676_p12 = pnand %p1674_p11, %p1671_p10 }
  0x3c   :  { %1679 = shalt.err (!%p1676_p12)
}
  0x3d   :  { %s1680_s26 = scalar_lea.vmem %s1942_s20, 256  ;;  %p1685_p0 = scmp.lt.s32.totalorder %s1942_s20, %s1942_s20 }
  0x3e   :  { %p1681_p13 = scmp.ne.s32.totalorder %s1942_s20, %s1680_s26  ;;  %p1686_p1 = scmp.lt.s32.totalorder %s1680_s26, %s1680_s26 }
  0x40   :  { %p1687_p2 = por %p1686_p1, %p1685_p0 }
  0x42   :  { %p1688_p3 = pnand %p1687_p2, %p1681_p13 }
  0x44   :  { %1691 = shalt.err (!%p1688_p3)
}
  0x45   :  { %62 = dma.hbm_to_vmem [thread:$0]  %s2268_s2, 256, %s1942_s20, [#allocation6], %s1816_s30, %s1816_s30, %s1817_s16  }
  0x46   :  { %s1820_s27 = smov [#allocation10]   ;;  %s1821_s3 = smov [#allocation11]  }
  0x47   :  { %s84_s28 = sshll.u32 %s1820_s27, 4  ;;  %s104_s21 = sshll.u32 %s1821_s3, 4  ;;  %s85_s28 = int_to_ptr.vmem [resolvable:$true] %s84_s28  ;;  %s1979_s21 = int_to_ptr.vmem [resolvable:$true] %s104_s21 }
  0x48   :  { %s1692_s29 = scalar_lea.hbm %s2272_s6, 1024 }
  0x49   :  { %p1693_p4 = scmp.ne.s32.totalorder %s2272_s6, %s1692_s29  ;;  %p1696_p5 = scmp.lt.u32.totalorder %s1692_s29, %s2272_s6 }
  0x4b   :  { %p1698_p6 = pnand %p1696_p5, %p1693_p4 }
  0x4d   :  { %1701 = shalt.err (!%p1698_p6)
}
  0x4e   :  { %s1702_s2 = scalar_lea.vmem %s85_s28, 1024  ;;  %p1707_p8 = scmp.lt.s32.totalorder %s85_s28, %s85_s28 }
  0x4f   :  { %p1703_p7 = scmp.ne.s32.totalorder %s85_s28, %s1702_s2  ;;  %p1708_p9 = scmp.lt.s32.totalorder %s1702_s2, %s1702_s2 }
  0x51   :  { %p1709_p10 = por %p1708_p9, %p1707_p8 }
  0x53   :  { %p1710_p11 = pnand %p1709_p10, %p1703_p7 }
  0x55   :  { %1713 = shalt.err (!%p1710_p11)
}
  0x56   :  { %90 = dma.hbm_to_vmem [thread:$0]  %s2272_s6, 1024, %s85_s28, [#allocation9], %s1816_s30, %s1816_s30, %s1817_s16  }
  0x57   :  { %s1714_s17 = scalar_lea.hbm %s2277_s11, 2048 }
  0x58   :  { %p1715_p12 = scmp.ne.s32.totalorder %s2277_s11, %s1714_s17  ;;  %p1718_p13 = scmp.lt.u32.totalorder %s1714_s17, %s2277_s11 }
  0x5a   :  { %p1720_p0 = pnand %p1718_p13, %p1715_p12 }
  0x5c   :  { %1723 = shalt.err (!%p1720_p0)
}
  0x5d   :  { %s1724_s29 = scalar_lea.vmem %s1979_s21, 2048  ;;  %p1729_p2 = scmp.lt.s32.totalorder %s1979_s21, %s1979_s21 }
  0x5e   :  { %p1725_p1 = scmp.ne.s32.totalorder %s1979_s21, %s1724_s29  ;;  %p1730_p3 = scmp.lt.s32.totalorder %s1724_s29, %s1724_s29 }
  0x60   :  { %p1731_p4 = por %p1730_p3, %p1729_p2 }
  0x62   :  { %p1732_p5 = pnand %p1731_p4, %p1725_p1 }
  0x64   :  { %1735 = shalt.err (!%p1732_p5)
}
  0x65   :  { %110 = dma.hbm_to_vmem [thread:$0]  %s2277_s11, 2048, %s1979_s21, [#allocation12], %s1816_s30, %s1816_s30, %s1817_s16  }
  0x66   :  { %1802 = dma.done.wait [#allocation3], 256  }
  0x67   :  { %1803 = vsyncadd [#allocation3], 4294967040 }
  0x68   :  { %1804 = dma.done.wait [#allocation6], 512  }
  0x69   :  { %1805 = vsyncadd [#allocation6], 4294966784 }
  0x6a   :  { %1806 = dma.done.wait [#allocation9], 1536  }
  0x6b   :  { %1807 = vsyncadd [#allocation9], 4294965760 }
  0x6c   :  { %1808 = dma.done.wait [#allocation12], 2048  }
  0x6d   :  { %1809 = vsyncadd [#allocation12], 4294965248  ;;  %v219_v0 = vld [vmem:[#allocation8] sm:$0xff]  ;;  %v220_v1 = vld [vmem:[#allocation8 + $0x8] sm:$0xff]  ;;  %vm223_vm0 = vcmask 261120   ;;  %vm135_vm1 = vcmask 130048  }
  0x6e   :  { %v221_v2 = vld [vmem:[#allocation8 + $0x10] sm:$0xff]  ;;  %v1469_v3 = vpack.c.bf16 %v220_v1, %v219_v0  ;;  %v222_v4 = vld [vmem:[#allocation8 + $0x18] sm:$0xff]  ;;  %v133_v5 = vld [vmem:[#allocation5] sm:$0xff] }
  0x6f   :  { %v134_v6 = vld [vmem:[#allocation5 + $0x8] sm:$0xff]  ;;  %v1473_v7 = vpack.c.bf16 %v222_v4, %v221_v2  ;;  %v217_v9 = vld [vmem:[#allocation7] sm:$0xff]  ;;  %v132_v11 = vld [vmem:[#allocation2 + $0x8] sm:$0xff] }
  0x70   :  { %v1465_v8 = vpack.c.bf16 %v134_v6, %v133_v5  ;;  %1470 = vmatprep.subr.bf16.mxu1 %v1469_v3  ;;  %1286 = vmatprep.mubr.msk.f32.mxu1 %vm223_vm0, %v217_v9  ;;  %v131_v10 = vld [vmem:[#allocation2] sm:$0xff]  ;;  %v218_v12 = vld [vmem:[#allocation7 + $0x8] sm:$0xff]  ;;  %v673_v16 = vld [vmem:[%s2273_s7 + $0x10] sm:$0xff] }
  0x71   :  { %1472 = vmatpush3.bf16.msra.mxu1 %v1469_v3  ;;  %1275 = vmatprep.mubr.msk.f32.mxu0 %vm135_vm1, %v131_v10  ;;  %v317_v13 = vld [vmem:[%s2271_s5] sm:$0xff]  ;;  %v672_v15 = vld [vmem:[%s2273_s7 + $0x8] sm:$0xff]  ;;  %v674_v18 = vld [vmem:[%s2273_s7 + $0x18] sm:$0xff] }
  0x72   :  { %1466 = vmatprep.subr.bf16.mxu0 %v1465_v8  ;;  %1474 = vmatprep.subr.bf16.mxu1 %v1473_v7  ;;  %v671_v14 = vld [vmem:[%s2273_s7] sm:$0xff]  ;;  %v1489_v19 = vpack.c.bf16 %v674_v18, %v673_v16  ;;  %v676_v21 = vld [vmem:[%s2273_s7 + $0x28] sm:$0xff]  ;;  %v677_v23 = vld [vmem:[%s2273_s7 + $0x30] sm:$0xff] }
  0x73   :  { %1468 = vmatpush3.bf16.msra.mxu0 %v1465_v8  ;;  %v1485_v17 = vpack.c.bf16 %v672_v15, %v671_v14  ;;  %v675_v20 = vld [vmem:[%s2273_s7 + $0x20] sm:$0xff]  ;;  %v678_v24 = vld [vmem:[%s2273_s7 + $0x38] sm:$0xff]  ;;  %v680_v27 = vld [vmem:[%s2273_s7 + $0x48] sm:$0xff] }
  0x74   :  { %v1493_v22 = vpack.c.bf16 %v676_v21, %v675_v20  ;;  %v1497_v25 = vpack.c.bf16 %v678_v24, %v677_v23  ;;  %v679_v26 = vld [vmem:[%s2273_s7 + $0x40] sm:$0xff]  ;;  %v318_v35 = vld [vmem:[%s2271_s5 + $0x8] sm:$0xff]  ;;  %v319_v36 = vld [vmem:[%s2271_s5 + $0x10] sm:$0xff] }
  0x75   :  { %1476 = vmatpush3.bf16.msra.mxu1 %v1473_v7  ;;  %v1501_v28 = vpack.c.bf16 %v680_v27, %v679_v26  ;;  %v320_v37 = vld [vmem:[%s2271_s5 + $0x18] sm:$0xff]  ;;  %v321_v38 = vld [vmem:[%s2271_s5 + $0x20] sm:$0xff]  ;;  %v322_v39 = vld [vmem:[%s2271_s5 + $0x28] sm:$0xff] }
  0x76   :  { %1276 = vmatmul.mubr.msk.f32.vlgmr.msra.gmra.mrb[0].mxu0 %vm135_vm1, %v132_v11  ;;  %1486 = vmatprep.subr.bf16.mxu1 %v1485_v17  ;;  %v323_v40 = vld [vmem:[%s2271_s5 + $0x30] sm:$0xff]  ;;  %v324_v41 = vld [vmem:[%s2271_s5 + $0x38] sm:$0xff]  ;;  %v325_v42 = vld [vmem:[%s2271_s5 + $0x40] sm:$0xff] }
  0x77   :  { %1293 = vmatprep.mubr.msk.f32.mxu0 %vm135_vm1, %v317_v13  ;;  %v326_v43 = vld [vmem:[%s2271_s5 + $0x48] sm:$0xff]  ;;  %v327_v44 = vld [vmem:[%s2271_s5 + $0x50] sm:$0xff]  ;;  %v328_v45 = vld [vmem:[%s2271_s5 + $0x58] sm:$0xff] }
  0x78   :  { %1287 = vmatmul.mubr.msk.f32.vlgmr.msra.gmra.mrb[0].mxu1 %vm223_vm0, %v218_v12  ;;  %v305_v46 = vld [vmem:[%s2270_s4] sm:$0xff]  ;;  %v306_v47 = vld [vmem:[%s2270_s4 + $0x8] sm:$0xff]  ;;  %v307_v48 = vld [vmem:[%s2270_s4 + $0x10] sm:$0xff] }
  0x79   :  { %1488 = vmatpush3.bf16.msra.mxu1 %v1485_v17  ;;  %v308_v49 = vld [vmem:[%s2270_s4 + $0x18] sm:$0xff]  ;;  %v309_v50 = vld [vmem:[%s2270_s4 + $0x20] sm:$0xff]  ;;  %v310_v51 = vld [vmem:[%s2270_s4 + $0x28] sm:$0xff] }
  0x7a   :  { %1490 = vmatprep.subr.bf16.mxu1 %v1489_v19  ;;  %v311_v52 = vld [vmem:[%s2270_s4 + $0x30] sm:$0xff]  ;;  %v312_v53 = vld [vmem:[%s2270_s4 + $0x38] sm:$0xff]  ;;  %v313_v54 = vld [vmem:[%s2270_s4 + $0x40] sm:$0xff] }
  0x7b   :  { %v314_v55 = vld [vmem:[%s2270_s4 + $0x48] sm:$0xff]  ;;  %v315_v56 = vld [vmem:[%s2270_s4 + $0x50] sm:$0xff]  ;;  %v316_v57 = vld [vmem:[%s2270_s4 + $0x58] sm:$0xff] }
  0x7c   :  { %v681_v58 = vld [vmem:[%s2273_s7 + $0x50] sm:$0xff]  ;;  %v682_v59 = vld [vmem:[%s2273_s7 + $0x58] sm:$0xff]  ;;  %v683_v61 = vld [vmem:[%s2273_s7 + $0x60] sm:$0xff] }
  0x7d   :  { %1492 = vmatpush3.bf16.msra.mxu1 %v1489_v19  ;;  %v1505_v60 = vpack.c.bf16 %v682_v59, %v681_v58  ;;  %v684_v62 = vld [vmem:[%s2273_s7 + $0x68] sm:$0xff]  ;;  %v685_v0 = vld [vmem:[%s2273_s7 + $0x70] sm:$0xff]  ;;  %v686_v1 = vld [vmem:[%s2273_s7 + $0x78] sm:$0xff] }
  0x7e   :  { %1494 = vmatprep.subr.bf16.mxu1 %v1493_v22  ;;  %v1509_v63 = vpack.c.bf16 %v684_v62, %v683_v61  ;;  %v1513_v2 = vpack.c.bf16 %v686_v1, %v685_v0  ;;  %v807_v3 = vld [vmem:[%s2275_s9] sm:$0xff]  ;;  %v808_v4 = vld [vmem:[%s2275_s9 + $0x8] sm:$0xff]  ;;  %v809_v5 = vld [vmem:[%s2275_s9 + $0x10] sm:$0xff] }
  0x7f   :  { %v1517_v6 = vpack.c.bf16 %v808_v4, %v807_v3  ;;  %v810_v7 = vld [vmem:[%s2275_s9 + $0x18] sm:$0xff]  ;;  %v811_v9 = vld [vmem:[%s2275_s9 + $0x20] sm:$0xff]  ;;  %v812_v10 = vld [vmem:[%s2275_s9 + $0x28] sm:$0xff] }
  0x80   :  { %v1521_v8 = vpack.c.bf16 %v810_v7, %v809_v5  ;;  %v1525_v11 = vpack.c.bf16 %v812_v10, %v811_v9  ;;  %v813_v12 = vld [vmem:[%s2275_s9 + $0x30] sm:$0xff]  ;;  %v814_v13 = vld [vmem:[%s2275_s9 + $0x38] sm:$0xff]  ;;  %v815_v15 = vld [vmem:[%s2275_s9 + $0x40] sm:$0xff] }
  0x81   :  { %1496 = vmatpush3.bf16.msra.mxu1 %v1493_v22  ;;  %v1529_v14 = vpack.c.bf16 %v814_v13, %v813_v12  ;;  %v816_v16 = vld [vmem:[%s2275_s9 + $0x48] sm:$0xff]  ;;  %v817_v18 = vld [vmem:[%s2275_s9 + $0x50] sm:$0xff]  ;;  %v818_v19 = vld [vmem:[%s2275_s9 + $0x58] sm:$0xff] }
  0x82   :  { %1498 = vmatprep.subr.bf16.mxu1 %v1497_v25  ;;  %v1533_v17 = vpack.c.bf16 %v816_v16, %v815_v15  ;;  %v1537_v20 = vpack.c.bf16 %v818_v19, %v817_v18  ;;  %v819_v21 = vld [vmem:[%s2275_s9 + $0x60] sm:$0xff]  ;;  %v820_v22 = vld [vmem:[%s2275_s9 + $0x68] sm:$0xff]  ;;  %v947_v61 = vld [vmem:[#allocation11 + $0x20] sm:$0xff] }
  0x83   :  { %v1541_v23 = vpack.c.bf16 %v820_v22, %v819_v21  ;;  %v946_v59 = vld [vmem:[#allocation11 + $0x18] sm:$0xff]  ;;  %v948_v62 = vld [vmem:[#allocation11 + $0x28] sm:$0xff]  ;;  %v949_v0 = vld [vmem:[#allocation11 + $0x30] sm:$0xff] }
  0x84   :  { %v950_v1 = vld [vmem:[#allocation11 + $0x38] sm:$0xff]  ;;  %v951_v3 = vld [vmem:[#allocation11 + $0x40] sm:$0xff]  ;;  %v952_v4 = vld [vmem:[#allocation11 + $0x48] sm:$0xff] }
  0x85   :  { %1500 = vmatpush3.bf16.msra.mxu1 %v1497_v25  ;;  %v1565_v5 = vpack.c.bf16 %v952_v4, %v951_v3  ;;  %v954_v7 = vld [vmem:[#allocation11 + $0x58] sm:$0xff]  ;;  %v955_v9 = vld [vmem:[#allocation11 + $0x60] sm:$0xff]  ;;  %v956_v10 = vld [vmem:[#allocation11 + $0x68] sm:$0xff] }
  0x86   :  { %1502 = vmatprep.subr.bf16.mxu1 %v1501_v28  ;;  %v1158_v12 = vld [vmem:[%s2274_s8] ss:$0 sm:$0xff] }
  0x89   :  { %1504 = vmatpush3.bf16.msra.mxu1 %v1501_v28  ;;  %v655_v28 = vld [vmem:[#allocation10] sm:$0xff] }
  0x8a   :  { %1506 = vmatprep.subr.bf16.mxu1 %v1505_v60 }
  0x8d   :  { %1508 = vmatpush3.bf16.msra.mxu1 %v1505_v60 }
  0x8e   :  { %1510 = vmatprep.subr.bf16.mxu1 %v1509_v63 }
  0x91   :  { %1512 = vmatpush3.bf16.msra.mxu1 %v1509_v63  ;;  %v1557_v63 = vpack.c.bf16 %v948_v62, %v947_v61 }
  0x92   :  { %1514 = vmatprep.subr.bf16.mxu1 %v1513_v2 }
  0x95   :  { %1516 = vmatpush3.bf16.msra.mxu1 %v1513_v2  ;;  %v1561_v2 = vpack.c.bf16 %v950_v1, %v949_v0 }
 0x149   :  { %v1277_v29 = vpop.f32.mrb[0].mxu0 }
 0x14a   :  { %v208_v30 = vpop.f32.mrb[1].mxu0 }
 0x14b   :  { %v1481_v31 = vpack.c.bf16 %v1277_v29, %v208_v30  ;;  %v1288_v32 = vpop.f32.mrb[0].mxu1  ;;  %v656_v30 = vld [vmem:[#allocation10 + $0x8] sm:$0xff] }
 0x14c   :  { %v296_v33 = vpop.f32.mrb[1].mxu1 }
 0x14d   :  { %v1477_v34 = vpack.c.bf16 %v1288_v32, %v296_v33 }
 0x14f   :  { %1478 = vmatprep.subr.bf16.mxu0 %v1477_v34 }
 0x150   :  { %1480 = vmatpush3.bf16.msra.mxu0 %v1477_v34  ;;  %v657_v34 = vld [vmem:[#allocation10 + $0x10] sm:$0xff] }
 0x151   :  { %1482 = vmatprep.subr.bf16.mxu0 %v1481_v31 }
 0x153   :  { %1294 = vmatmul.mubr.msk.f32.vlgmr.msra.gmra.mrb[2].mxu0 %vm135_vm1, %v318_v35 }
 0x154   :  { %1484 = vmatpush3.bf16.msra.mxu0 %v1481_v31  ;;  %1296 = vmatprep.mubr.msk.f32.mxu0 %vm135_vm1, %v319_v36  ;;  %v658_v36 = vld [vmem:[#allocation10 + $0x18] sm:$0xff] }
 0x155   :  { %1518 = vmatprep.subr.bf16.mxu0 %v1517_v6 }
 0x157   :  { %1297 = vmatmul.mubr.msk.f32.gmra.mrb[4].mxu0 %vm135_vm1, %v320_v37 }
 0x158   :  { %1299 = vmatprep.mubr.msk.f32.mxu0 %vm135_vm1, %v321_v38 }
 0x15b   :  { %1300 = vmatmul.mubr.msk.f32.gmra.mrb[6].mxu0 %vm135_vm1, %v322_v39 }
 0x15c   :  { %1302 = vmatprep.mubr.msk.f32.mxu0 %vm135_vm1, %v323_v40  ;;  %v659_v40 = vld [vmem:[#allocation10 + $0x20] sm:$0xff] }
 0x15f   :  { %1303 = vmatmul.mubr.msk.f32.gmra.mrb[8].mxu0 %vm135_vm1, %v324_v41 }
 0x160   :  { %1305 = vmatprep.mubr.msk.f32.mxu0 %vm135_vm1, %v325_v42  ;;  %v660_v42 = vld [vmem:[#allocation10 + $0x28] sm:$0xff] }
 0x163   :  { %1306 = vmatmul.mubr.msk.f32.gmra.mrb[10].mxu0 %vm135_vm1, %v326_v43 }
 0x164   :  { %1308 = vmatprep.mubr.msk.f32.mxu0 %vm135_vm1, %v327_v44 }
 0x167   :  { %1309 = vmatmul.mubr.msk.f32.gmra.mrb[12].mxu0 %vm135_vm1, %v328_v45 }
 0x168   :  { %1315 = vmatprep.mubr.msk.f32.mxu0 %vm135_vm1, %v305_v46  ;;  %v661_v46 = vld [vmem:[#allocation10 + $0x30] sm:$0xff] }
 0x16b   :  { %1316 = vmatmul.mubr.msk.f32.vlgmr.msra.gmra.mrb[2].mxu0 %vm135_vm1, %v306_v47 }
 0x16c   :  { %1318 = vmatprep.mubr.msk.f32.mxu0 %vm135_vm1, %v307_v48  ;;  %1520 = vmatpush3.bf16.msra.mxu0 %v1517_v6  ;;  %v662_v48 = vld [vmem:[#allocation10 + $0x38] sm:$0xff]  ;;  %v953_v6 = vld [vmem:[#allocation11 + $0x50] sm:$0xff] }
 0x16d   :  { %1522 = vmatprep.subr.bf16.mxu0 %v1521_v8 }
 0x16f   :  { %1319 = vmatmul.mubr.msk.f32.gmra.mrb[4].mxu0 %vm135_vm1, %v308_v49 }
 0x170   :  { %1321 = vmatprep.mubr.msk.f32.mxu0 %vm135_vm1, %v309_v50  ;;  %1524 = vmatpush3.bf16.msra.mxu0 %v1521_v8  ;;  %v1569_v8 = vpack.c.bf16 %v954_v7, %v953_v6 }
 0x171   :  { %1526 = vmatprep.subr.bf16.mxu0 %v1525_v11 }
 0x173   :  { %1322 = vmatmul.mubr.msk.f32.gmra.mrb[6].mxu0 %vm135_vm1, %v310_v51 }
 0x174   :  { %1324 = vmatprep.mubr.msk.f32.mxu0 %vm135_vm1, %v311_v52  ;;  %1528 = vmatpush3.bf16.msra.mxu0 %v1525_v11  ;;  %v821_v52 = vld [vmem:[%s2275_s9 + $0x70] sm:$0xff]  ;;  %v1573_v11 = vpack.c.bf16 %v956_v10, %v955_v9 }
 0x175   :  { %1530 = vmatprep.subr.bf16.mxu0 %v1529_v14 }
 0x177   :  { %1325 = vmatmul.mubr.msk.f32.gmra.mrb[8].mxu0 %vm135_vm1, %v312_v53  ;;  %v822_v53 = vld [vmem:[%s2275_s9 + $0x78] sm:$0xff] }
 0x178   :  { %1327 = vmatprep.mubr.msk.f32.mxu0 %vm135_vm1, %v313_v54  ;;  %1532 = vmatpush3.bf16.msra.mxu0 %v1529_v14  ;;  %v1545_v54 = vpack.c.bf16 %v822_v53, %v821_v52 }
 0x179   :  { %1534 = vmatprep.subr.bf16.mxu0 %v1533_v17 }
 0x17b   :  { %1328 = vmatmul.mubr.msk.f32.gmra.mrb[10].mxu0 %vm135_vm1, %v314_v55  ;;  %v943_v55 = vld [vmem:[#allocation11] sm:$0xff] }
 0x17c   :  { %1330 = vmatprep.mubr.msk.f32.mxu0 %vm135_vm1, %v315_v56  ;;  %1536 = vmatpush3.bf16.msra.mxu0 %v1533_v17  ;;  %v944_v56 = vld [vmem:[#allocation11 + $0x8] sm:$0xff] }
 0x17d   :  { %1538 = vmatprep.subr.bf16.mxu0 %v1537_v20  ;;  %v1549_v58 = vpack.c.bf16 %v944_v56, %v943_v55 }
 0x17f   :  { %1331 = vmatmul.mubr.msk.f32.gmra.mrb[12].mxu0 %vm135_vm1, %v316_v57  ;;  %v945_v57 = vld [vmem:[#allocation11 + $0x10] sm:$0xff]  ;;  %1550 = vmatprep.subr.bf16.mxu1 %v1549_v58 }
 0x180   :  { %1540 = vmatpush3.bf16.msra.mxu0 %v1537_v20  ;;  %v1553_v60 = vpack.c.bf16 %v946_v59, %v945_v57 }
 0x181   :  { %1542 = vmatprep.subr.bf16.mxu0 %v1541_v23 }
 0x184   :  { %1544 = vmatpush3.bf16.msra.mxu0 %v1541_v23 }
 0x185   :  { %1546 = vmatprep.subr.bf16.mxu0 %v1545_v54 }
 0x188   :  { %1548 = vmatpush3.bf16.msra.mxu0 %v1545_v54 }
 0x23e   :  { %v1317_v24 = vpop.f32.mrb[2].mxu0 }
 0x23f   :  { %652 = vst [vmem:[#allocation13 + $0x8] sm:$0xff] %v1317_v24  ;;  %v592_v25 = vpop.f32.mrb[3].mxu0 }
 0x240   :  { %651 = vst [vmem:[#allocation13] sm:$0xff] %v592_v25 }
 0x242   :  { %v1320_v26 = vpop.f32.mrb[4].mxu0 }
 0x243   :  { %654 = vst [vmem:[#allocation13 + $0x18] sm:$0xff] %v1320_v26  ;;  %v602_v27 = vpop.f32.mrb[5].mxu0 }
 0x244   :  { %653 = vst [vmem:[#allocation13 + $0x10] sm:$0xff] %v602_v27 }
 0x246   :  { %v1323_v29 = vpop.f32.mrb[6].mxu0 }
 0x247   :  { %v612_v31 = vpop.f32.mrb[7].mxu0  ;;  %v664_v33 = vmul.f32 %v1323_v29, %v656_v30 }
 0x248   :  { %v663_v32 = vmul.f32 %v655_v28, %v612_v31 }
 0x24a   :  { %v1326_v35 = vpop.f32.mrb[8].mxu0  ;;  %1365 = vmatprep.mubr.f32.mxu1 %v663_v32 }
 0x24b   :  { %v622_v37 = vpop.f32.mrb[9].mxu0  ;;  %1366 = vmatmul.mubr.f32.vlgmr.msra.gmra.mrb[2].mxu1 %v664_v33  ;;  %v666_v39 = vmul.f32 %v1326_v35, %v658_v36 }
 0x24c   :  { %v665_v38 = vmul.f32 %v657_v34, %v622_v37  ;;  %1552 = vmatpush3.bf16.msra.mxu1 %v1549_v58  ;;  %v957_v37 = vld [vmem:[#allocation11 + $0x70] sm:$0xff] }
 0x24d   :  { %1554 = vmatprep.subr.bf16.mxu1 %v1553_v60 }
 0x24e   :  { %v1329_v41 = vpop.f32.mrb[10].mxu0  ;;  %1368 = vmatprep.mubr.f32.mxu1 %v665_v38  ;;  %v958_v38 = vld [vmem:[#allocation11 + $0x78] sm:$0xff] }
 0x24f   :  { %v632_v43 = vpop.f32.mrb[11].mxu0  ;;  %1369 = vmatmul.mubr.f32.gmra.mrb[4].mxu1 %v666_v39  ;;  %v668_v45 = vmul.f32 %v1329_v41, %v660_v42  ;;  %v1577_v39 = vpack.c.bf16 %v958_v38, %v957_v37 }
 0x250   :  { %v667_v44 = vmul.f32 %v659_v40, %v632_v43  ;;  %1556 = vmatpush3.bf16.msra.mxu1 %v1553_v60  ;;  %v1159_v40 = vld [vmem:[%s2276_s10] ss:$0 sm:$0xff]  ;;  %s1822_s10 = smov [#allocation13]  }
 0x251   :  { %1558 = vmatprep.subr.bf16.mxu1 %v1557_v63  ;;  %s1084_s5 = sshll.u32 %s1822_s10, 4  ;;  %s1085_s5 = int_to_ptr.vmem [resolvable:$true] %s1084_s5 }
 0x252   :  { %v1332_v47 = vpop.f32.mrb[12].mxu0  ;;  %1371 = vmatprep.mubr.f32.mxu1 %v667_v44  ;;  %s1736_s27 = scalar_lea.vmem %s1085_s5, 512  ;;  %p1741_p7 = scmp.lt.s32.totalorder %s1085_s5, %s1085_s5 }
 0x253   :  { %v642_v49 = vpop.f32.mrb[13].mxu0  ;;  %1372 = vmatmul.mubr.f32.gmra.mrb[6].mxu1 %v668_v45  ;;  %v670_v51 = vmul.f32 %v1332_v47, %v662_v48  ;;  %p1737_p6 = scmp.ne.s32.totalorder %s1085_s5, %s1736_s27  ;;  %p1742_p8 = scmp.lt.s32.totalorder %s1736_s27, %s1736_s27 }
 0x254   :  { %v669_v50 = vmul.f32 %v661_v46, %v642_v49  ;;  %1560 = vmatpush3.bf16.msra.mxu1 %v1557_v63 }
 0x255   :  { %1562 = vmatprep.subr.bf16.mxu1 %v1561_v2  ;;  %p1743_p9 = por %p1742_p8, %p1741_p7 }
 0x256   :  { %1374 = vmatprep.mubr.f32.mxu1 %v669_v50 }
 0x257   :  { %1375 = vmatmul.mubr.f32.gmra.mrb[8].mxu1 %v670_v51  ;;  %p1744_p10 = pnand %p1743_p9, %p1737_p6 }
 0x258   :  { %1564 = vmatpush3.bf16.msra.mxu1 %v1561_v2 }
 0x259   :  { %1566 = vmatprep.subr.bf16.mxu1 %v1565_v5 }
 0x25c   :  { %1568 = vmatpush3.bf16.msra.mxu1 %v1565_v5 }
 0x25d   :  { %1570 = vmatprep.subr.bf16.mxu1 %v1569_v8 }
 0x260   :  { %1572 = vmatpush3.bf16.msra.mxu1 %v1569_v8 }
 0x261   :  { %1574 = vmatprep.subr.bf16.mxu1 %v1573_v11 }
 0x264   :  { %1576 = vmatpush3.bf16.msra.mxu1 %v1573_v11 }
 0x265   :  { %1578 = vmatprep.subr.bf16.mxu1 %v1577_v39 }
 0x268   :  { %1580 = vmatpush3.bf16.msra.mxu1 %v1577_v39 }
 0x31e   :  { %v1367_v13 = vpop.f32.mrb[2].mxu1 }
 0x31f   :  { %v766_v14 = vadd.f32 %v1367_v13, %v1158_v12  ;;  %v760_v15 = vpop.f32.mrb[3].mxu1 }
 0x320   :  { %v761_v16 = vadd.f32 %v1158_v12, %v760_v15 }
 0x321   :  { %v800_v19 = vmax.f32 %v766_v14, 0.0 }
 0x322   :  { %v799_v17 = vmax.f32 %v761_v16, 0.0  ;;  %v1370_v18 = vpop.f32.mrb[4].mxu1 }
 0x323   :  { %v776_v20 = vadd.f32 %v1370_v18, %v1158_v12  ;;  %v770_v21 = vpop.f32.mrb[5].mxu1 }
 0x324   :  { %v771_v22 = vadd.f32 %v1158_v12, %v770_v21  ;;  %1409 = vmatprep.mubr.f32.mxu0 %v799_v17 }
 0x325   :  { %1410 = vmatmul.mubr.f32.vlgmr.msra.gmra.mrb[14].mxu0 %v800_v19  ;;  %v802_v25 = vmax.f32 %v776_v20, 0.0 }
 0x326   :  { %v801_v23 = vmax.f32 %v771_v22, 0.0  ;;  %v1373_v24 = vpop.f32.mrb[6].mxu1 }
 0x327   :  { %v786_v26 = vadd.f32 %v1373_v24, %v1158_v12  ;;  %v780_v27 = vpop.f32.mrb[7].mxu1 }
 0x328   :  { %v781_v28 = vadd.f32 %v1158_v12, %v780_v27  ;;  %1412 = vmatprep.mubr.f32.mxu0 %v801_v23 }
 0x329   :  { %1413 = vmatmul.mubr.f32.gmra.mrb[16].mxu0 %v802_v25  ;;  %v804_v31 = vmax.f32 %v786_v26, 0.0 }
 0x32a   :  { %v803_v29 = vmax.f32 %v781_v28, 0.0  ;;  %v1376_v30 = vpop.f32.mrb[8].mxu1 }
 0x32b   :  { %v796_v32 = vadd.f32 %v1376_v30, %v1158_v12  ;;  %v790_v33 = vpop.f32.mrb[9].mxu1 }
 0x32c   :  { %v791_v34 = vadd.f32 %v1158_v12, %v790_v33  ;;  %1415 = vmatprep.mubr.f32.mxu0 %v803_v29 }
 0x32d   :  { %1416 = vmatmul.mubr.f32.gmra.mrb[18].mxu0 %v804_v31  ;;  %v806_v36 = vmax.f32 %v796_v32, 0.0 }
 0x32e   :  { %v805_v35 = vmax.f32 %v791_v34, 0.0 }
 0x330   :  { %1418 = vmatprep.mubr.f32.mxu0 %v805_v35 }
 0x331   :  { %1419 = vmatmul.mubr.f32.gmra.mrb[20].mxu0 %v806_v36 }
 0x3f8   :  { %v1411_v41 = vpop.f32.mrb[14].mxu0 }
 0x3f9   :  { %v902_v42 = vadd.f32 %v1411_v41, %v1159_v40  ;;  %v896_v43 = vpop.f32.mrb[15].mxu0 }
 0x3fa   :  { %v897_v44 = vadd.f32 %v1159_v40, %v896_v43 }
 0x3fb   :  { %v936_v47 = vmax.f32 %v902_v42, 0.0 }
 0x3fc   :  { %v935_v45 = vmax.f32 %v897_v44, 0.0  ;;  %v1414_v46 = vpop.f32.mrb[16].mxu0 }
 0x3fd   :  { %v912_v48 = vadd.f32 %v1414_v46, %v1159_v40  ;;  %v906_v49 = vpop.f32.mrb[17].mxu0 }
 0x3fe   :  { %v907_v50 = vadd.f32 %v1159_v40, %v906_v49  ;;  %1453 = vmatprep.mubr.f32.mxu1 %v935_v45 }
 0x3ff   :  { %1454 = vmatmul.mubr.f32.vlgmr.msra.gmra.mrb[10].mxu1 %v936_v47  ;;  %v938_v53 = vmax.f32 %v912_v48, 0.0 }
 0x400   :  { %v937_v51 = vmax.f32 %v907_v50, 0.0  ;;  %v1417_v52 = vpop.f32.mrb[18].mxu0 }
 0x401   :  { %v922_v54 = vadd.f32 %v1417_v52, %v1159_v40  ;;  %v916_v55 = vpop.f32.mrb[19].mxu0 }
 0x402   :  { %v917_v56 = vadd.f32 %v1159_v40, %v916_v55  ;;  %1456 = vmatprep.mubr.f32.mxu1 %v937_v51 }
 0x403   :  { %1457 = vmatmul.mubr.f32.gmra.mrb[12].mxu1 %v938_v53  ;;  %v940_v59 = vmax.f32 %v922_v54, 0.0 }
 0x404   :  { %v939_v57 = vmax.f32 %v917_v56, 0.0  ;;  %v1420_v58 = vpop.f32.mrb[20].mxu0 }
 0x405   :  { %v932_v60 = vadd.f32 %v1420_v58, %v1159_v40  ;;  %v926_v61 = vpop.f32.mrb[21].mxu0 }
 0x406   :  { %v927_v62 = vadd.f32 %v1159_v40, %v926_v61  ;;  %1459 = vmatprep.mubr.f32.mxu1 %v939_v57 }
 0x407   :  { %1460 = vmatmul.mubr.f32.gmra.mrb[14].mxu1 %v940_v59  ;;  %v942_v0 = vmax.f32 %v932_v60, 0.0 }
 0x408   :  { %v941_v63 = vmax.f32 %v927_v62, 0.0 }
 0x40a   :  { %1462 = vmatprep.mubr.f32.mxu1 %v941_v63 }
 0x40b   :  { %1463 = vmatmul.mubr.f32.gmra.mrb[16].mxu1 %v942_v0 }
 0x40c   :  { %1747 = shalt.err (!%p1744_p10)
}
 0x40d   :  { %s1748_s19 = scalar_lea.hbm %s2279_s13, 512 }
 0x40e   :  { %p1749_p11 = scmp.ne.s32.totalorder %s2279_s13, %s1748_s19  ;;  %p1752_p12 = scmp.lt.u32.totalorder %s1748_s19, %s2279_s13 }
 0x410   :  { %p1754_p13 = pnand %p1752_p12, %p1749_p11 }
 0x412   :  { %1757 = shalt.err (!%p1754_p13)
}
 0x413   :  { %1090 = dma.vmem_to_hbm [thread:$0]  %s1085_s5, 512, %s2279_s13, [#allocation4], %s1816_s30, %s1816_s30, %s1817_s16  }
 0x414   :  { %v1160_v1 = vld [vmem:[%s2278_s12] ss:$0 sm:$0xff]  ;;  %s1823_s23 = smov [#allocation14]  }
 0x415   :  { %s1096_s24 = sshll.u32 %s1823_s23, 4  ;;  %s1097_s24 = int_to_ptr.vmem [resolvable:$true] %s1096_s24 }
 0x416   :  { %s1758_s13 = scalar_lea.vmem %s1097_s24, 512  ;;  %p1763_p1 = scmp.lt.s32.totalorder %s1097_s24, %s1097_s24 }
 0x417   :  { %p1759_p0 = scmp.ne.s32.totalorder %s1097_s24, %s1758_s13  ;;  %p1764_p2 = scmp.lt.s32.totalorder %s1758_s13, %s1758_s13 }
 0x419   :  { %p1765_p3 = por %p1764_p2, %p1763_p1 }
 0x41b   :  { %p1766_p4 = pnand %p1765_p3, %p1759_p0 }
 0x4d2   :  { %v1455_v2 = vpop.f32.mrb[10].mxu1 }
 0x4d3   :  { %v1038_v3 = vadd.f32 %v1455_v2, %v1160_v1  ;;  %v1032_v4 = vpop.f32.mrb[11].mxu1 }
 0x4d4   :  { %v1033_v5 = vadd.f32 %v1160_v1, %v1032_v4 }
 0x4d5   :  { %1072 = vst [vmem:[#allocation14 + $0x8] sm:$0xff] %v1038_v3 }
 0x4d6   :  { %1071 = vst [vmem:[#allocation14] sm:$0xff] %v1033_v5  ;;  %v1458_v6 = vpop.f32.mrb[12].mxu1 }
 0x4d7   :  { %v1048_v7 = vadd.f32 %v1458_v6, %v1160_v1  ;;  %v1042_v8 = vpop.f32.mrb[13].mxu1 }
 0x4d8   :  { %v1043_v9 = vadd.f32 %v1160_v1, %v1042_v8 }
 0x4d9   :  { %1074 = vst [vmem:[#allocation14 + $0x18] sm:$0xff] %v1048_v7 }
 0x4da   :  { %1073 = vst [vmem:[#allocation14 + $0x10] sm:$0xff] %v1043_v9  ;;  %v1461_v10 = vpop.f32.mrb[14].mxu1 }
 0x4db   :  { %v1058_v11 = vadd.f32 %v1461_v10, %v1160_v1  ;;  %v1052_v12 = vpop.f32.mrb[15].mxu1 }
 0x4dc   :  { %1769 = shalt.err (!%p1766_p4)
}
 0x4dd   :  { %s1770_s20 = scalar_lea.hbm %s2280_s14, 512 }
 0x4de   :  { %p1771_p5 = scmp.ne.s32.totalorder %s2280_s14, %s1770_s20  ;;  %p1774_p6 = scmp.lt.u32.totalorder %s1770_s20, %s2280_s14 }
 0x4e0   :  { %p1776_p7 = pnand %p1774_p6, %p1771_p5 }
 0x4e2   :  { %1779 = shalt.err (!%p1776_p7)
}
 0x4e3   :  { %1102 = dma.vmem_to_hbm [thread:$0]  %s1097_s24, 512, %s2280_s14, [#allocation15], %s1816_s30, %s1816_s30, %s1817_s16   ;;  %v1053_v13 = vadd.f32 %v1160_v1, %v1052_v12  ;;  %1076 = vst [vmem:[#allocation16 + $0x8] sm:$0xff] %v1058_v11  ;;  %v1464_v14 = vpop.f32.mrb[16].mxu1 }
 0x4e4   :  { %s1824_s17 = smov [#allocation16]   ;;  %v1068_v15 = vadd.f32 %v1464_v14, %v1160_v1  ;;  %v1062_v16 = vpop.f32.mrb[17].mxu1 }
 0x4e5   :  { %s1108_s10 = sshll.u32 %s1824_s17, 4  ;;  %1075 = vst [vmem:[#allocation16] sm:$0xff] %v1053_v13  ;;  %v1063_v17 = vadd.f32 %v1160_v1, %v1062_v16  ;;  %s1109_s10 = int_to_ptr.vmem [resolvable:$true] %s1108_s10 }
 0x4e6   :  { %1078 = vst [vmem:[#allocation16 + $0x18] sm:$0xff] %v1068_v15  ;;  %s1780_s5 = scalar_lea.vmem %s1109_s10, 512  ;;  %p1785_p9 = scmp.lt.s32.totalorder %s1109_s10, %s1109_s10 }
 0x4e7   :  { %1077 = vst [vmem:[#allocation16 + $0x10] sm:$0xff] %v1063_v17  ;;  %p1781_p8 = scmp.ne.s32.totalorder %s1109_s10, %s1780_s5  ;;  %p1786_p10 = scmp.lt.s32.totalorder %s1780_s5, %s1780_s5 }
 0x4e9   :  { %p1787_p11 = por %p1786_p10, %p1785_p9 }
 0x4eb   :  { %p1788_p12 = pnand %p1787_p11, %p1781_p8 }
 0x4ed   :  { %1791 = shalt.err (!%p1788_p12)
}
 0x4ee   :  { %s1792_s3 = scalar_lea.hbm %s2281_s15, 512 }
 0x4ef   :  { %p1793_p13 = scmp.ne.s32.totalorder %s2281_s15, %s1792_s3  ;;  %p1796_p0 = scmp.lt.u32.totalorder %s1792_s3, %s2281_s15 }
 0x4f1   :  { %p1798_p1 = pnand %p1796_p0, %p1793_p13 }
 0x4f3   :  { %1801 = shalt.err (!%p1798_p1)
}
 0x4f4   :  { %1114 = dma.vmem_to_hbm [thread:$0]  %s1109_s10, 512, %s2281_s15, [#allocation15], %s1816_s30, %s1816_s30, %s1817_s16  }
 0x4f5   :  { %1810 = dma.done.wait [#allocation4], 512  }
 0x4f6   :  { %1811 = vsyncadd [#allocation4], 4294966784 }
 0x4f7   :  { %1812 = dma.done.wait [#allocation15], 1024  }
 0x4f8   :  { %1813 = vsyncadd [#allocation15], 4294966272 }
 0x4f9   :  { %1124 = vsyncpa [#allocation3], 1 }
 0x4fa   :  { %1125 = vsyncpa [#allocation6], 1 }
 0x4fb   :  { %1126 = vsyncpa [#allocation9], 1 }
 0x4fc   :  { %1127 = vsyncpa [#allocation12], 1 }
 0x4fd   :  { %1128 = vsyncpa [#allocation4], 1 }
 0x4fe   :  { %1129 = vsyncpa [#allocation15], 1 }

</bundles_post_ra>
